<compile_context>
chip_gen: v5e
topology: v5e:2x2
jax: 0.10.0
libtpu: 0.0.40
codegen_flags: <defaults>
</compile_context>

<pallas_src>
import math

import jax
import jax.numpy as jnp
from jax.experimental import pallas as pl
from jax.experimental.pallas import tpu as pltpu


def _pick_cols(n: int, last_dim: int, max_cols: int = 8192) -> int:
    """2-D factorisation n = rows * cols used only to express the copy as
    row-chunked DMAs.  Prefer a multiple-of-128 divisor (nice even slabs);
    otherwise fall back to the array's own trailing dim (always a divisor).
    This replaces the old fallback that could collapse to cols=1 and explode
    the grid — the DMA path does not care about lane density, only about
    having a sane row axis to chunk along."""
    c = (max_cols // 128) * 128
    while c >= 128:
        if n % c == 0:
            return c
        c -= 128
    return max(1, last_dim)


def _hbm_copy(x2d: jnp.ndarray, rows: int, cols: int, itemsize: int) -> jnp.ndarray:
    """Identity copy of a (rows, cols) HBM slab via chunked HBM->HBM DMAs."""
    # ~16 MiB of payload per grid step / DMA descriptor.  No VMEM is consumed
    # (raw HBM refs on both sides), so the chunk size only controls how many
    # programs the parallel grid has: large inputs get >= 2 chunks so both v7x
    # TensorCores participate; small inputs collapse to a single DMA.
    target_bytes = 16 * 1024 * 1024
    row_bytes = max(1, cols * itemsize)
    chunk_rows = max(1, min(rows, target_bytes // row_bytes))
    g = pl.cdiv(rows, chunk_rows)                 # static Python int
    last_rows = rows - (g - 1) * chunk_rows       # static, in [1, chunk_rows]
    n_bytes = rows * cols * itemsize

    def kernel(x_hbm, o_hbm, sem):
        i = pl.program_id(0)
        start = pl.multiple_of(i * chunk_rows, chunk_rows)

        def issue(nrows):
            cp = pltpu.make_async_copy(
                x_hbm.at[pl.ds(start, nrows), :],
                o_hbm.at[pl.ds(start, nrows), :],
                sem.at[0],
            )
            cp.start()
            cp.wait()

        if g == 1:
            # Single chunk: one DMA for the whole slab.
            issue(last_rows)
        elif last_rows == chunk_rows:
            # Even split: every program copies a full chunk.
            issue(chunk_rows)
        else:
            # Uneven split: all chunk sizes stay static; only which branch
            # runs depends on program_id.
            @pl.when(i < g - 1)
            def _():
                issue(chunk_rows)

            @pl.when(i == g - 1)
            def _():
                issue(last_rows)

    return pl.pallas_call(
        kernel,
        out_shape=jax.ShapeDtypeStruct((rows, cols), x2d.dtype),
        grid_spec=pltpu.PrefetchScalarGridSpec(
            num_scalar_prefetch=0,
            grid=(g,),
            # Raw HBM refs: no BlockSpec pipeline, no VMEM staging at all.
            in_specs=[pl.BlockSpec(memory_space=pl.ANY)],
            out_specs=pl.BlockSpec(memory_space=pl.ANY),
            scratch_shapes=[pltpu.SemaphoreType.DMA((1,))],
        ),
        compiler_params=pltpu.CompilerParams(
            # Each program owns a disjoint row range -> safe to shard across
            # v7x's 2 TensorCores; near-neutral (harmless) on v5e/v6e.
            dimension_semantics=("parallel",),
            # Output is written only through DMA side effects.
            has_side_effects=True,
        ),
        # Tell XLA this custom call is pure memory traffic (read + write).
        cost_estimate=pl.CostEstimate(
            flops=0, transcendentals=0, bytes_accessed=2 * n_bytes),
    )(x2d)


def unfold_time(x: jnp.ndarray, T: int) -> jnp.ndarray:
    """Pallas implementation of UnfoldTime.forward: x.view(B // T, T, *x.shape[1:])."""
    B = x.shape[0]
    assert B % T == 0, f"leading dim {B} must be divisible by T={T}"
    out_shape = (B // T, T) + tuple(x.shape[1:])

    n = math.prod(x.shape)
    if n == 0:
        return x.reshape(out_shape)

    itemsize = jnp.dtype(x.dtype).itemsize
    last_dim = x.shape[-1] if x.ndim >= 1 else 1
    cols = _pick_cols(n, last_dim)
    rows = n // cols

    # Reshapes of a contiguous array are metadata-only (no extra HBM pass).
    x2d = x.reshape(rows, cols)
    out2d = _hbm_copy(x2d, rows, cols, itemsize)
    return out2d.reshape(out_shape)
    # TODO(synk): if the caller can donate x, input_output_aliases={0: 0} with a
    # pltpu.touch-only body would make this a true zero-copy view; not done here
    # because the reference check below keeps x alive (XLA would re-copy anyway).


if __name__ == "__main__":
    key = jax.random.PRNGKey(0)
    T = 4
    # batch = 8 frames = 2 clips of T=4 frames, channels=4, spatial 16x16 (NCHW)
    x = jax.random.normal(key, (8, 4, 16, 16), dtype=jnp.float32)
    y = unfold_time(x, T)
    jax.block_until_ready(y)

    ref = x.reshape(8 // T, T, 4, 16, 16)
    assert y.shape == ref.shape, (y.shape, ref.shape)
    assert y.dtype == x.dtype
    assert bool(jnp.all(y == ref))
    print("KERNEL_OK")
</pallas_src>

<mosaic_0001>
module attributes {stable_mosaic.version = 11 : i64} {
  func.func @kernel(%arg0: i32, %arg1: memref<1x8192xf32, #tpu.memory_space<any>>, %arg2: memref<1x8192xf32, #tpu.memory_space<any>>, %arg3: memref<1x!tpu.dma_semaphore, #tpu.memory_space<semaphore_mem>>) attributes {dimension_semantics = [#tpu.dimension_semantics<parallel>], iteration_bounds = array<i64: 1>, scalar_prefetch = 0 : i64, scratch_operands = 1 : i64, tpu.core_type = #tpu.core_type<tc>, window_params = [{}, {}]} {
    %c1_i32 = arith.constant 1 : i32
    %0 = arith.muli %arg0, %c1_i32 : i32
    %1 = tpu.assume_multiple %0, 1 : i32
    %c0_i32 = arith.constant 0 : i32
    %c0_i32_0 = arith.constant 0 : i32
    %2 = tpu.memref_slice %arg1[%1, %c0_i32_0] : memref<1x8192xf32, #tpu.memory_space<any>> -> memref<1x8192xf32, #tpu.memory_space<any>>
    %c0_i32_1 = arith.constant 0 : i32
    %3 = tpu.memref_slice %arg2[%1, %c0_i32_1] : memref<1x8192xf32, #tpu.memory_space<any>> -> memref<1x8192xf32, #tpu.memory_space<any>>
    %4 = tpu.memref_slice %arg3[%c0_i32] : memref<1x!tpu.dma_semaphore, #tpu.memory_space<semaphore_mem>> -> memref<1x!tpu.dma_semaphore, #tpu.memory_space<semaphore_mem>>
    %5 = tpu.memref_squeeze %4 : memref<1x!tpu.dma_semaphore, #tpu.memory_space<semaphore_mem>> -> memref<!tpu.dma_semaphore, #tpu.memory_space<semaphore_mem>>
    tpu.enqueue_dma source(%2 : memref<1x8192xf32, #tpu.memory_space<any>>) target(%3 : memref<1x8192xf32, #tpu.memory_space<any>>) target_semaphore(%5 : memref<!tpu.dma_semaphore, #tpu.memory_space<semaphore_mem>>)
    %c0_i32_2 = arith.constant 0 : i32
    %c0_i32_3 = arith.constant 0 : i32
    %6 = tpu.memref_slice %arg1[%1, %c0_i32_3] : memref<1x8192xf32, #tpu.memory_space<any>> -> memref<1x8192xf32, #tpu.memory_space<any>>
    %c0_i32_4 = arith.constant 0 : i32
    %7 = tpu.memref_slice %arg2[%1, %c0_i32_4] : memref<1x8192xf32, #tpu.memory_space<any>> -> memref<1x8192xf32, #tpu.memory_space<any>>
    %8 = tpu.memref_slice %arg3[%c0_i32_2] : memref<1x!tpu.dma_semaphore, #tpu.memory_space<semaphore_mem>> -> memref<1x!tpu.dma_semaphore, #tpu.memory_space<semaphore_mem>>
    %9 = tpu.memref_squeeze %8 : memref<1x!tpu.dma_semaphore, #tpu.memory_space<semaphore_mem>> -> memref<!tpu.dma_semaphore, #tpu.memory_space<semaphore_mem>>
    tpu.wait_dma2 semaphore(%9 : memref<!tpu.dma_semaphore, #tpu.memory_space<semaphore_mem>>) src(%6 : memref<1x8192xf32, #tpu.memory_space<any>>) dst(%7 : memref<1x8192xf32, #tpu.memory_space<any>>)
    return
  }
}

</mosaic_0001>

<bundles_post_ra>
// kernel: tpu_custom_call.1
= control target key start
LH: loop header
LB: loop body
LE: loop exit
PB: predicated region body
PF: predicated region fallthrough
CT: control target
= control target key end

     0   :  { %s35_s12 = smov [#allocation2]   ;;  %s36_s13 = smov [#allocation3]   ;;  %s54_s0 = inlined_call_operand.hbm [shape: f32[1,8192], index: 0, kind: input, shape index: {}]   ;;  %s55_s1 = inlined_call_operand.hbm [shape: f32[1,8192], index: 1, kind: output, shape index: {}]  }
   0x1   :  { %s13_s8 = sshll.u32 %s54_s0, 4  ;;  %s15_s11 = sshll.u32 %s55_s1, 4  ;;  %s14_s8 = int_to_ptr.hbm [resolvable:$true] %s13_s8  ;;  %s16_s11 = int_to_ptr.hbm [resolvable:$true] %s15_s11 }
   0x2   :  { %s37_s14 = smov 0  }
   0x3   :  { %19 = dma.general %s14_s8, 1024, %s16_s11, %s35_s12, %s36_s13, [#allocation4], %s37_s14, 0  }
   0x4   :  { %33 = dma.done.wait [#allocation2], 1024 }
   0x5   :  { %34 = vsyncadd [#allocation2], 4294966272 }
   0x6   :  { %23 = vsyncmov [#allocation2] }
   0x9   :  { %s24_s15 = vpop.sfrf %23 }
   0xa   :  { %p29_p0 = scmp.ne.s32.totalorder %s24_s15, 0 }
   0xc   :  { %28 = shalt.err (%p29_p0)  }

</bundles_post_ra>
